<compile_context>
chip_gen: v7x
topology: tpu7x:2x2x1
jax: 0.10.0
libtpu: 0.0.40
codegen_flags: <defaults>
</compile_context>

<pallas_src>
import math

import jax
import jax.numpy as jnp
from jax.experimental import pallas as pl
from jax.experimental.pallas import tpu as pltpu


def _round_up(x, m):
    return -(-x // m) * m


def _make_ce_kernel(C, W, inv_h):
    """Kernel body, specialized on compile-time constants C (channels), W (width), 1/H."""

    def kernel(x_ref, t_ref, sel_ref, o_ref):
        # x_ref, t_ref: (TN, C, THW)  logits / soft targets (lane-dense flattened H*W tile)
        # sel_ref:      (THW, Wp)     bf16 selector, sel[p, w] = (p % W == w), zero-padded cols
        # o_ref:        (TN, W)       f32 resident accumulator: sum_h loss, /H at the last step
        tn, _, thw = x_ref.shape

        @pl.when(pl.program_id(1) == 0)
        def _():
            o_ref[...] = jnp.zeros_like(o_ref)

        # ---- Pass 1: fused first-argmax(targets) pick + running max of logits. ----
        # Strict ">" reproduces torch.argmax's first-max tie-break. Carries stay in the input
        # dtype (ordering of bf16 compares is exact); one cast to f32 after the loop.
        # C is a small compile-time constant -> fully unrolled static loop.
        t_best = jnp.full((tn, thw), -jnp.inf, t_ref.dtype)
        picked = jnp.zeros((tn, thw), x_ref.dtype)
        m = jnp.full((tn, thw), -jnp.inf, x_ref.dtype)
        for c in range(C):
            x_c = x_ref[:, c, :]
            t_c = t_ref[:, c, :]
            take = t_c > t_best
            t_best = jnp.where(take, t_c, t_best)
            picked = jnp.where(take, x_c, picked)
            m = jnp.maximum(m, x_c)
        picked32 = picked.astype(jnp.float32)
        m32 = m.astype(jnp.float32)
        # NOTE: if a pixel's targets were all -inf/NaN no channel is picked and logit 0 is used;
        # harmless for (softmax-normalized) soft targets.

        # ---- Pass 2: stabilized sum(exp(x - m)) in f32 (reloads x from VMEM; loads are cheap). ----
        s = jnp.zeros((tn, thw), jnp.float32)
        for c in range(C):
            s = s + jnp.exp(x_ref[:, c, :].astype(jnp.float32) - m32)

        # Per-pixel CE: logsumexp(x) - x[argmax(t)]
        loss = m32 + jnp.log(s) - picked32                          # (TN, THW) f32

        # ---- Fused sum over the H rows covered by this tile (lane-dense, on the idle MXU). ----
        # loss @ sel sums all lanes with equal (p % W) into output column w. Splitting the f32
        # loss into 3 bf16 terms makes the standard bf16 matmul path (exact 0/1 rhs, f32
        # accumulate) reproduce the f32 row-sum to ~2^-27 relative error, regardless of the
        # backend's matmul precision policy.
        selb = sel_ref[...]
        hi = loss.astype(jnp.bfloat16)
        r = loss - hi.astype(jnp.float32)
        mid = r.astype(jnp.bfloat16)
        lo = (r - mid.astype(jnp.float32)).astype(jnp.bfloat16)
        part = (jnp.dot(hi, selb, preferred_element_type=jnp.float32)
                + jnp.dot(mid, selb, preferred_element_type=jnp.float32)
                + jnp.dot(lo, selb, preferred_element_type=jnp.float32))
        o_ref[...] += part[:, :W]

        @pl.when(pl.program_id(1) == pl.num_programs(1) - 1)
        def _():
            o_ref[...] = o_ref[...] * inv_h

    return kernel


def _choose_hw_tile(hw, w, max_tile=4096):
    """Largest tile <= max_tile that divides hw and is a multiple of both 128 (lane tiling)
    and w (so every tile covers whole image rows); falls back to the full extent."""
    if hw <= max_tile:
        return hw
    g = (128 * w) // math.gcd(128, w)
    for t in range(max_tile - max_tile % g, 0, -g):
        if hw % t == 0:
            return t
    return hw


def _choose_batch_tile(n, budget_rows):
    """Pick TN: a multiple of 8 (sublane-full vregs, unmasked output blocks) dividing n
    whenever n permits, as large as the VMEM row budget allows."""
    cap = max(1, min(n, budget_rows))
    for tn in range(cap - cap % 8, 0, -8):          # aligned divisor within budget
        if n % tn == 0:
            return tn
    if cap >= n:                                    # small batch: accept sublane under-occupancy
        return n
    for tn in range(n - n % 8, 0, -8):              # aligned divisor, slightly over budget
        if n % tn == 0:
            return tn
    return n


def _sublane_padded_c(c, itemsize):
    granule = 8 * (4 // itemsize) if itemsize in (1, 2, 4) else 8
    return _round_up(c, granule)


def ce_loss(inputs, targets):
    """inputs, targets: (n, c, h, w) float arrays. Returns (n, w) float32 loss."""
    N, C, H, W = inputs.shape
    assert targets.shape == inputs.shape
    HW = H * W

    # Free reshape (NCHW is contiguous): lane-dense flattened H*W axis.
    x = inputs.reshape(N, C, HW)
    t = targets.reshape(N, C, HW)

    THW = _choose_hw_tile(HW, W)
    pTHW = _round_up(THW, 128)
    Wp = _round_up(W, 128)

    # VMEM model per grid step (double-buffered pipeline), used to size TN:
    #   inputs : 2 buffers x TN x pad(C) x THW x itemsize, per input  (C pads to 8/16/32 sublanes)
    #   sel    : 2 buffers x THW x Wp x 2 (bf16; fetched once but still double-buffered)
    #   temps  : ~7 live (TN, THW) f32 compute temporaries
    #   output : double-buffered (TN, W) f32 accumulator (tiny, folded into the slack term)
    x_item = jnp.dtype(inputs.dtype).itemsize
    t_item = jnp.dtype(targets.dtype).itemsize
    budget = 32 << 20                                # fits v7x's 64 MiB/TC VMEM with headroom
    sel_bytes = 2 * pTHW * Wp * 2
    per_row = (2 * (_sublane_padded_c(C, x_item) * x_item
                    + _sublane_padded_c(C, t_item) * t_item) * pTHW
               + 7 * pTHW * 4)
    budget_rows = max(1, (budget - sel_bytes - (64 << 10)) // per_row)
    TN = _choose_batch_tile(N, budget_rows)
    # Keep >= 2 steps on the parallel (batch) axis when cheap (v7x has 2 TensorCores).
    if N // TN < 2 and N >= 16:
        for tn in range((N // 2) // 8 * 8, 0, -8):
            if N % tn == 0:
                TN = tn
                break
    grid = (N // TN, HW // THW)

    # Constant 0/1 column selector: sel[p, w] = 1 iff p % W == w (zero-padded to Wp lanes).
    # Valid for every tile because THW is a multiple of W.
    p_mod = jnp.arange(THW, dtype=jnp.int32) % W
    sel = (p_mod[:, None] == jnp.arange(Wp, dtype=jnp.int32)[None, :]).astype(jnp.bfloat16)

    cost = pl.CostEstimate(
        flops=N * HW * (10 * C + 6 * Wp),
        transcendentals=N * HW * (C + 1),
        bytes_accessed=N * C * HW * (x_item + t_item) + N * W * 4 + THW * Wp * 2,
    )

    kernel = _make_ce_kernel(C, W, 1.0 / H)
    return pl.pallas_call(
        kernel,
        out_shape=jax.ShapeDtypeStruct((N, W), jnp.float32),
        grid_spec=pltpu.PrefetchScalarGridSpec(
            num_scalar_prefetch=0,
            grid=grid,
            in_specs=[
                pl.BlockSpec((TN, C, THW), lambda i, j: (i, 0, j)),
                pl.BlockSpec((TN, C, THW), lambda i, j: (i, 0, j)),
                pl.BlockSpec((THW, Wp), lambda i, j: (0, 0)),      # constant block: fetched once
            ],
            # resident accumulator across the (reduction) j axis; written back once per i
            out_specs=pl.BlockSpec((TN, W), lambda i, j: (i, 0)),
        ),
        compiler_params=pltpu.CompilerParams(
            dimension_semantics=("parallel", "arbitrary"),
            vmem_limit_bytes=48 * 1024 * 1024,
        ),
        cost_estimate=cost,
    )(x, t, sel)


def _ce_loss_ref(inputs, targets):
    """Pure-JAX reference matching the PyTorch module."""
    tgt = jnp.argmax(targets, axis=1)                                # (n, h, w)
    logp = jax.nn.log_softmax(inputs.astype(jnp.float32), axis=1)    # (n, c, h, w)
    picked = jnp.take_along_axis(logp, tgt[:, None], axis=1)[:, 0]   # (n, h, w)
    return jnp.mean(-picked, axis=1)                                 # (n, w)


if __name__ == "__main__":
    key = jax.random.PRNGKey(0)
    k_in, k_tg = jax.random.split(key)

    N, C, H, W = 2, 4, 16, 16
    inputs = jax.random.normal(k_in, (N, C, H, W), dtype=jnp.float32)
    targets = jax.nn.softmax(
        jax.random.normal(k_tg, (N, C, H, W), dtype=jnp.float32), axis=1
    )

    out = jax.block_until_ready(ce_loss(inputs, targets))
    ref = _ce_loss_ref(inputs, targets)

    assert out.shape == (N, W), out.shape
    assert jnp.allclose(out, ref, atol=1e-5, rtol=1e-5), (out, ref)

    print("KERNEL_OK")
</pallas_src>

<mosaic_0001>
module attributes {stable_mosaic.version = 11 : i64} {
  func.func @kernel(%arg0: i32, %arg1: i32, %arg2: memref<2x4x256xf32, #tpu.memory_space<vmem>>, %arg3: memref<2x4x256xf32, #tpu.memory_space<vmem>>, %arg4: memref<256x128xbf16, #tpu.memory_space<vmem>>, %arg5: memref<2x16xf32, #tpu.memory_space<vmem>>) attributes {dimension_semantics = [#tpu.dimension_semantics<parallel>, #tpu.dimension_semantics<arbitrary>], iteration_bounds = array<i64: 1, 1>, scalar_prefetch = 0 : i64, scratch_operands = 0 : i64, tpu.core_type = #tpu.core_type<tc>, window_params = [{transform_indices = @transform_0, window_bounds = array<i64: 2, 4, 256>}, {transform_indices = @transform_1, window_bounds = array<i64: 2, 4, 256>}, {pipeline_mode = #tpu.pipeline_mode<synchronous>, transform_indices = @transform_2, window_bounds = array<i64: 256, 128>}, {transform_indices = @transform_3, window_bounds = array<i64: 2, 16>}]} {
    %c0_i32 = arith.constant 0 : i32
    %0 = arith.cmpi eq, %arg1, %c0_i32 : i32
    %1 = arith.extui %0 : i1 to i32
    %c0_i32_0 = arith.constant 0 : i32
    %2 = arith.cmpi ne, %1, %c0_i32_0 : i32
    scf.if %2 {
      %cst_47 = arith.constant 0.000000e+00 : f32
      %81 = vector.broadcast %cst_47 : f32 to vector<2x16xf32>
      %c0_48 = arith.constant 0 : index
      %c0_49 = arith.constant 0 : index
      %82 = vector.load %arg5[%c0_48, %c0_49] : memref<2x16xf32, #tpu.memory_space<vmem>>, vector<2x16xf32>
      tpu.vector_store %arg5[%c0_48, %c0_49], %81 {strides = array<i32>} : memref<2x16xf32, #tpu.memory_space<vmem>>, vector<2x16xf32>,
    } else {
    }
    %cst = arith.constant 0xFF800000 : f32
    %3 = vector.broadcast %cst : f32 to vector<2x256xf32>
    %cst_1 = arith.constant 0.000000e+00 : f32
    %4 = vector.broadcast %cst_1 : f32 to vector<2x256xf32>
    %cst_2 = arith.constant 0xFF800000 : f32
    %5 = vector.broadcast %cst_2 : f32 to vector<2x256xf32>
    %c0 = arith.constant 0 : index
    %c0_3 = arith.constant 0 : index
    %c0_4 = arith.constant 0 : index
    %6 = vector.load %arg2[%c0, %c0_3, %c0_4] : memref<2x4x256xf32, #tpu.memory_space<vmem>>, vector<2x1x256xf32>
    %7 = vector.shape_cast %6 : vector<2x1x256xf32> to vector<2x256xf32>
    %c0_5 = arith.constant 0 : index
    %c0_6 = arith.constant 0 : index
    %c0_7 = arith.constant 0 : index
    %8 = vector.load %arg3[%c0_5, %c0_6, %c0_7] : memref<2x4x256xf32, #tpu.memory_space<vmem>>, vector<2x1x256xf32>
    %9 = vector.shape_cast %8 : vector<2x1x256xf32> to vector<2x256xf32>
    %10 = arith.cmpf ogt, %9, %3 : vector<2x256xf32>
    %11 = arith.select %10, %9, %3 : vector<2x256xi1>, vector<2x256xf32>
    %12 = arith.select %10, %7, %4 : vector<2x256xi1>, vector<2x256xf32>
    %13 = arith.maximumf %5, %7 : vector<2x256xf32>
    %c0_8 = arith.constant 0 : index
    %c1 = arith.constant 1 : index
    %c0_9 = arith.constant 0 : index
    %14 = vector.load %arg2[%c0_8, %c1, %c0_9] : memref<2x4x256xf32, #tpu.memory_space<vmem>>, vector<2x1x256xf32>
    %15 = vector.shape_cast %14 : vector<2x1x256xf32> to vector<2x256xf32>
    %c0_10 = arith.constant 0 : index
    %c1_11 = arith.constant 1 : index
    %c0_12 = arith.constant 0 : index
    %16 = vector.load %arg3[%c0_10, %c1_11, %c0_12] : memref<2x4x256xf32, #tpu.memory_space<vmem>>, vector<2x1x256xf32>
    %17 = vector.shape_cast %16 : vector<2x1x256xf32> to vector<2x256xf32>
    %18 = arith.cmpf ogt, %17, %11 : vector<2x256xf32>
    %19 = arith.select %18, %17, %11 : vector<2x256xi1>, vector<2x256xf32>
    %20 = arith.select %18, %15, %12 : vector<2x256xi1>, vector<2x256xf32>
    %21 = arith.maximumf %13, %15 : vector<2x256xf32>
    %c0_13 = arith.constant 0 : index
    %c2 = arith.constant 2 : index
    %c0_14 = arith.constant 0 : index
    %22 = vector.load %arg2[%c0_13, %c2, %c0_14] : memref<2x4x256xf32, #tpu.memory_space<vmem>>, vector<2x1x256xf32>
    %23 = vector.shape_cast %22 : vector<2x1x256xf32> to vector<2x256xf32>
    %c0_15 = arith.constant 0 : index
    %c2_16 = arith.constant 2 : index
    %c0_17 = arith.constant 0 : index
    %24 = vector.load %arg3[%c0_15, %c2_16, %c0_17] : memref<2x4x256xf32, #tpu.memory_space<vmem>>, vector<2x1x256xf32>
    %25 = vector.shape_cast %24 : vector<2x1x256xf32> to vector<2x256xf32>
    %26 = arith.cmpf ogt, %25, %19 : vector<2x256xf32>
    %27 = arith.select %26, %25, %19 : vector<2x256xi1>, vector<2x256xf32>
    %28 = arith.select %26, %23, %20 : vector<2x256xi1>, vector<2x256xf32>
    %29 = arith.maximumf %21, %23 : vector<2x256xf32>
    %c0_18 = arith.constant 0 : index
    %c3 = arith.constant 3 : index
    %c0_19 = arith.constant 0 : index
    %30 = vector.load %arg2[%c0_18, %c3, %c0_19] : memref<2x4x256xf32, #tpu.memory_space<vmem>>, vector<2x1x256xf32>
    %31 = vector.shape_cast %30 : vector<2x1x256xf32> to vector<2x256xf32>
    %c0_20 = arith.constant 0 : index
    %c3_21 = arith.constant 3 : index
    %c0_22 = arith.constant 0 : index
    %32 = vector.load %arg3[%c0_20, %c3_21, %c0_22] : memref<2x4x256xf32, #tpu.memory_space<vmem>>, vector<2x1x256xf32>
    %33 = vector.shape_cast %32 : vector<2x1x256xf32> to vector<2x256xf32>
    %34 = arith.cmpf ogt, %33, %27 : vector<2x256xf32>
    %35 = arith.select %34, %31, %28 : vector<2x256xi1>, vector<2x256xf32>
    %36 = arith.maximumf %29, %31 : vector<2x256xf32>
    %cst_23 = arith.constant 0.000000e+00 : f32
    %37 = vector.broadcast %cst_23 : f32 to vector<2x256xf32>
    %c0_24 = arith.constant 0 : index
    %c0_25 = arith.constant 0 : index
    %c0_26 = arith.constant 0 : index
    %38 = vector.load %arg2[%c0_24, %c0_25, %c0_26] : memref<2x4x256xf32, #tpu.memory_space<vmem>>, vector<2x1x256xf32>
    %39 = vector.shape_cast %38 : vector<2x1x256xf32> to vector<2x256xf32>
    %40 = arith.subf %39, %36 : vector<2x256xf32>
    %41 = math.exp %40 : vector<2x256xf32>
    %42 = arith.addf %37, %41 : vector<2x256xf32>
    %c0_27 = arith.constant 0 : index
    %c1_28 = arith.constant 1 : index
    %c0_29 = arith.constant 0 : index
    %43 = vector.load %arg2[%c0_27, %c1_28, %c0_29] : memref<2x4x256xf32, #tpu.memory_space<vmem>>, vector<2x1x256xf32>
    %44 = vector.shape_cast %43 : vector<2x1x256xf32> to vector<2x256xf32>
    %45 = arith.subf %44, %36 : vector<2x256xf32>
    %46 = math.exp %45 : vector<2x256xf32>
    %47 = arith.addf %42, %46 : vector<2x256xf32>
    %c0_30 = arith.constant 0 : index
    %c2_31 = arith.constant 2 : index
    %c0_32 = arith.constant 0 : index
    %48 = vector.load %arg2[%c0_30, %c2_31, %c0_32] : memref<2x4x256xf32, #tpu.memory_space<vmem>>, vector<2x1x256xf32>
    %49 = vector.shape_cast %48 : vector<2x1x256xf32> to vector<2x256xf32>
    %50 = arith.subf %49, %36 : vector<2x256xf32>
    %51 = math.exp %50 : vector<2x256xf32>
    %52 = arith.addf %47, %51 : vector<2x256xf32>
    %c0_33 = arith.constant 0 : index
    %c3_34 = arith.constant 3 : index
    %c0_35 = arith.constant 0 : index
    %53 = vector.load %arg2[%c0_33, %c3_34, %c0_35] : memref<2x4x256xf32, #tpu.memory_space<vmem>>, vector<2x1x256xf32>
    %54 = vector.shape_cast %53 : vector<2x1x256xf32> to vector<2x256xf32>
    %55 = arith.subf %54, %36 : vector<2x256xf32>
    %56 = math.exp %55 : vector<2x256xf32>
    %57 = arith.addf %52, %56 : vector<2x256xf32>
    %58 = math.log %57 : vector<2x256xf32>
    %59 = arith.addf %36, %58 : vector<2x256xf32>
    %60 = arith.subf %59, %35 : vector<2x256xf32>
    %c0_36 = arith.constant 0 : index
    %c0_37 = arith.constant 0 : index
    %61 = vector.load %arg4[%c0_36, %c0_37] : memref<256x128xbf16, #tpu.memory_space<vmem>>, vector<256x128xbf16>
    %62 = arith.truncf %60 : vector<2x256xf32> to vector<2x256xbf16>
    %63 = arith.extf %62 : vector<2x256xbf16> to vector<2x256xf32>
    %64 = arith.subf %60, %63 : vector<2x256xf32>
    %65 = arith.truncf %64 : vector<2x256xf32> to vector<2x256xbf16>
    %66 = arith.extf %65 : vector<2x256xbf16> to vector<2x256xf32>
    %67 = arith.subf %64, %66 : vector<2x256xf32>
    %68 = arith.truncf %67 : vector<2x256xf32> to vector<2x256xbf16>
    %cst_38 = arith.constant dense<0.000000e+00> : vector<2x128xf32>
    %69 = tpu.matmul %62, %61, %cst_38 {dimension_numbers = #tpu.dot_dimension_numbers<[1], [0], [0], [1], [0, 0, 1, 1], [], []>} : vector<2x256xbf16>, vector<256x128xbf16>, vector<2x128xf32> -> vector<2x128xf32>
    %cst_39 = arith.constant dense<0.000000e+00> : vector<2x128xf32>
    %70 = tpu.matmul %65, %61, %cst_39 {dimension_numbers = #tpu.dot_dimension_numbers<[1], [0], [0], [1], [0, 0, 1, 1], [], []>} : vector<2x256xbf16>, vector<256x128xbf16>, vector<2x128xf32> -> vector<2x128xf32>
    %71 = arith.addf %69, %70 : vector<2x128xf32>
    %cst_40 = arith.constant dense<0.000000e+00> : vector<2x128xf32>
    %72 = tpu.matmul %68, %61, %cst_40 {dimension_numbers = #tpu.dot_dimension_numbers<[1], [0], [0], [1], [0, 0, 1, 1], [], []>} : vector<2x256xbf16>, vector<256x128xbf16>, vector<2x128xf32> -> vector<2x128xf32>
    %73 = arith.addf %71, %72 : vector<2x128xf32>
    %c0_41 = arith.constant 0 : index
    %c0_42 = arith.constant 0 : index
    %74 = vector.load %arg5[%c0_41, %c0_42] : memref<2x16xf32, #tpu.memory_space<vmem>>, vector<2x16xf32>
    %75 = vector.extract_strided_slice %73 {offsets = [0, 0], sizes = [2, 16], strides = [1, 1]} : vector<2x128xf32> to vector<2x16xf32>
    %76 = arith.addf %74, %75 : vector<2x16xf32>
    %c0_43 = arith.constant 0 : index
    %c0_44 = arith.constant 0 : index
    %77 = vector.load %arg5[%c0_43, %c0_44] : memref<2x16xf32, #tpu.memory_space<vmem>>, vector<2x16xf32>
    tpu.vector_store %arg5[%c0_43, %c0_44], %76 {strides = array<i32>} : memref<2x16xf32, #tpu.memory_space<vmem>>, vector<2x16xf32>,
    %c0_i32_45 = arith.constant 0 : i32
    %78 = arith.cmpi eq, %arg1, %c0_i32_45 : i32
    %79 = arith.extui %78 : i1 to i32
    %c0_i32_46 = arith.constant 0 : i32
    %80 = arith.cmpi ne, %79, %c0_i32_46 : i32
    scf.if %80 {
      %c0_47 = arith.constant 0 : index
      %c0_48 = arith.constant 0 : index
      %81 = vector.load %arg5[%c0_47, %c0_48] : memref<2x16xf32, #tpu.memory_space<vmem>>, vector<2x16xf32>
      %cst_49 = arith.constant 6.250000e-02 : f32
      %82 = vector.broadcast %cst_49 : f32 to vector<2x16xf32>
      %83 = arith.mulf %81, %82 : vector<2x16xf32>
      %c0_50 = arith.constant 0 : index
      %c0_51 = arith.constant 0 : index
      %84 = vector.load %arg5[%c0_50, %c0_51] : memref<2x16xf32, #tpu.memory_space<vmem>>, vector<2x16xf32>
      tpu.vector_store %arg5[%c0_50, %c0_51], %83 {strides = array<i32>} : memref<2x16xf32, #tpu.memory_space<vmem>>, vector<2x16xf32>,
    } else {
    }
    return
  }
  func.func @transform_0(%arg0: i32, %arg1: i32) -> (i32, i32, i32) {
    %c0_i32 = arith.constant 0 : i32
    %c0_i32_0 = arith.constant 0 : i32
    return %arg0, %c0_i32, %arg1 : i32, i32, i32
  }
  func.func @transform_1(%arg0: i32, %arg1: i32) -> (i32, i32, i32) {
    %c0_i32 = arith.constant 0 : i32
    %c0_i32_0 = arith.constant 0 : i32
    return %arg0, %c0_i32, %arg1 : i32, i32, i32
  }
  func.func @transform_2(%arg0: i32, %arg1: i32) -> (i32, i32) {
    %c0_i32 = arith.constant 0 : i32
    %c0_i32_0 = arith.constant 0 : i32
    %c0_i32_1 = arith.constant 0 : i32
    return %c0_i32, %c0_i32_0 : i32, i32
  }
  func.func @transform_3(%arg0: i32, %arg1: i32) -> (i32, i32) {
    %c0_i32 = arith.constant 0 : i32
    %c0_i32_0 = arith.constant 0 : i32
    return %arg0, %c0_i32 : i32, i32
  }
}

</mosaic_0001>

<bundles_post_ra>
// kernel: tpu_custom_call.1
= control target key start
LH: loop header
LB: loop body
LE: loop exit
PB: predicated region body
PF: predicated region fallthrough
CT: control target
= control target key end

     0   :  { %8 = vsyncpa [#allocation3], 0  ;;  %s1121_s0 = inlined_call_operand.hbm [shape: f32[2,4,256], index: 0, kind: input, shape index: {}]   ;;  %s1122_s1 = inlined_call_operand.hbm [shape: f32[2,4,256], index: 1, kind: input, shape index: {}]   ;;  %s1123_s2 = inlined_call_operand.hbm [shape: bf16[256,128], index: 2, kind: input, shape index: {}]   ;;  %s1124_s3 = inlined_call_operand.hbm [shape: f32[2,16], index: 3, kind: output, shape index: {}]  }
   0x1   :  { %9 = vsyncpa [#allocation6], 0 }
   0x2   :  { %10 = vsyncpa [#allocation4], 0  ;;  %s869_s12 = smov [#allocation5]   ;;  %s870_s14 = smov [#allocation2]  }
   0x3   :  { %s28_s13 = sshll.u32 %s869_s12, 4  ;;  %s16_s15 = sshll.u32 %s870_s14, 4  ;;  %s29_s13 = int_to_ptr.vmem [resolvable:$true] %s28_s13  ;;  %s899_s15 = int_to_ptr.vmem [resolvable:$true] %s16_s15 }
   0x4   :  { %s775_s18 = scalar_lea.hbm %s1122_s1, 256 }
   0x5   :  { %p776_p0 = scmp.ne.s32.totalorder %s1122_s1, %s775_s18  ;;  %p779_p1 = scmp.lt.u32.totalorder %s775_s18, %s1122_s1 }
   0x7   :  { %p781_p2 = pnand %p779_p1, %p776_p0 }
   0x9   :  { %784 = shalt.err (!%p781_p2)
}
   0xa   :  { %s785_s23 = scalar_lea.vmem %s29_s13, 256  ;;  %p790_p4 = scmp.lt.s32.totalorder %s29_s13, %s29_s13 }
   0xb   :  { %p786_p3 = scmp.ne.s32.totalorder %s29_s13, %s785_s23  ;;  %p791_p5 = scmp.lt.s32.totalorder %s785_s23, %s785_s23 }
   0xd   :  { %p792_p6 = por %p791_p5, %p790_p4 }
   0xf   :  { %p793_p7 = pnand %p792_p6, %p786_p3 }
  0x11   :  { %796 = shalt.err (!%p793_p7)
}
  0x12   :  { %s871_s24 = smov 128   ;;  %s872_s25 = smov 8  }
  0x13   :  { %34 = dma.hbm_to_vmem [thread:$0]  %s1122_s1, 256, %s29_s13, [#allocation6], %s871_s24, %s871_s24, %s872_s25  }
  0x14   :  { %s797_s30 = scalar_lea.hbm %s1121_s0, 256 }
  0x15   :  { %p798_p8 = scmp.ne.s32.totalorder %s1121_s0, %s797_s30  ;;  %p801_p9 = scmp.lt.u32.totalorder %s797_s30, %s1121_s0 }
  0x17   :  { %p803_p10 = pnand %p801_p9, %p798_p8 }
  0x19   :  { %806 = shalt.err (!%p803_p10)
}
  0x1a   :  { %s807_s8 = scalar_lea.vmem %s899_s15, 256  ;;  %p812_p12 = scmp.lt.s32.totalorder %s899_s15, %s899_s15 }
  0x1b   :  { %p808_p11 = scmp.ne.s32.totalorder %s899_s15, %s807_s8  ;;  %p813_p13 = scmp.lt.s32.totalorder %s807_s8, %s807_s8 }
  0x1d   :  { %p814_p0 = por %p813_p13, %p812_p12 }
  0x1f   :  { %p815_p1 = pnand %p814_p0, %p808_p11 }
  0x21   :  { %818 = shalt.err (!%p815_p1)
}
  0x22   :  { %22 = dma.hbm_to_vmem [thread:$0]  %s1121_s0, 256, %s899_s15, [#allocation3], %s871_s24, %s871_s24, %s872_s25  }
  0x23   :  { %s873_s10 = smov [#allocation7]   ;;  %s819_s14 = scalar_lea.hbm %s1123_s2, 2048 }
  0x24   :  { %s40_s11 = sshll.u32 %s873_s10, 4  ;;  %p820_p2 = scmp.ne.s32.totalorder %s1123_s2, %s819_s14  ;;  %s41_s11 = int_to_ptr.vmem [resolvable:$true] %s40_s11 }
  0x25   :  { %p823_p3 = scmp.lt.u32.totalorder %s819_s14, %s1123_s2 }
  0x27   :  { %p825_p4 = pnand %p823_p3, %p820_p2 }
  0x29   :  { %828 = shalt.err (!%p825_p4)
}
  0x2a   :  { %s829_s20 = scalar_lea.vmem %s41_s11, 2048  ;;  %p834_p6 = scmp.lt.s32.totalorder %s41_s11, %s41_s11 }
  0x2b   :  { %p830_p5 = scmp.ne.s32.totalorder %s41_s11, %s829_s20  ;;  %p835_p7 = scmp.lt.s32.totalorder %s829_s20, %s829_s20 }
  0x2d   :  { %p836_p8 = por %p835_p7, %p834_p6 }
  0x2f   :  { %p837_p9 = pnand %p836_p8, %p830_p5 }
  0x31   :  { %840 = shalt.err (!%p837_p9)
}
  0x32   :  { %s874_s0 = smov 64   ;;  %s875_s15 = smov 4  }
  0x33   :  { %46 = dma.hbm_to_vmem [thread:$0]  %s1123_s2, 2048, %s41_s11, [#allocation6], %s874_s0, %s874_s0, %s875_s15  }
  0x34   :  { %863 = dma.done.wait [#allocation3], 256  }
  0x35   :  { %864 = vsyncadd [#allocation3], 4294967040 }
  0x36   :  { %865 = dma.done.wait [#allocation6], 2304  }
  0x37   :  { %866 = vsyncadd [#allocation6], 4294964992  ;;  %v942_v0 = vld [vmem:[#allocation7 + $0x40] sm:$0xff]   ;;  %v948_v2 = vld [vmem:[#allocation7 + $0x48] sm:$0xff]   ;;  %vm364_vm8 = vcmask 1041409   ;;  %vm61_vm9 = vcmask 123904  }
  0x38   :  { %v944_v1 = vld [vmem:[#allocation7] sm:$0xff]   ;;  %663 = vmatprep.subr.bf16.mxu0 %v942_v0  ;;  %685 = vmatprep.subr.bf16.mxu1 %v942_v0  ;;  %v952_v3 = vld [vmem:[#allocation7 + $0x8] sm:$0xff]   ;;  %v956_v4 = vld [vmem:[#allocation7 + $0x50] sm:$0xff]   ;;  %s878_s2 = smov [#allocation8]  }
  0x39   :  { %664 = vmatpush3.bf16.msra.mxu0 %v944_v1  ;;  %686 = vmatpush3.bf16.msra.mxu1 %v944_v1  ;;  %v960_v5 = vld [vmem:[#allocation7 + $0x10] sm:$0xff]   ;;  %v964_v6 = vld [vmem:[#allocation7 + $0x58] sm:$0xff]   ;;  %v972_v8 = vld [vmem:[#allocation7 + $0x60] sm:$0xff]   ;;  %s637_s23 = sshll.u32 %s878_s2, 4  ;;  %s638_s23 = int_to_ptr.vmem [resolvable:$true] %s637_s23 }
  0x3a   :  { %665 = vmatprep.subr.bf16.mxu0 %v948_v2  ;;  %687 = vmatprep.subr.bf16.mxu1 %v948_v2  ;;  %v968_v7 = vld [vmem:[#allocation7 + $0x18] sm:$0xff]   ;;  %v976_v9 = vld [vmem:[#allocation7 + $0x20] sm:$0xff]   ;;  %v980_v10 = vld [vmem:[#allocation7 + $0x68] sm:$0xff]   ;;  %s841_s24 = scalar_lea.vmem %s638_s23, 32  ;;  %p846_p11 = scmp.lt.s32.totalorder %s638_s23, %s638_s23 }
  0x3b   :  { %v982_v11 = vld [vmem:[#allocation2] ss:$4 sm:$0x3]  ;;  %v984_v12 = vld [vmem:[#allocation2 + $0x8] ss:$4 sm:$0x3]  ;;  %p842_p10 = scmp.ne.s32.totalorder %s638_s23, %s841_s24  ;;  %p847_p12 = scmp.lt.s32.totalorder %s841_s24, %s841_s24 }
  0x3c   :  { %v986_v13 = vld [vmem:[#allocation2 + $0x1] ss:$4 sm:$0x3]  ;;  %v990_v14 = vld [vmem:[#allocation7 + $0x28] sm:$0xff]   ;;  %v994_v15 = vld [vmem:[#allocation7 + $0x70] sm:$0xff]  }
  0x3d   :  { %666 = vmatpush3.bf16.msra.mxu0 %v952_v3  ;;  %688 = vmatpush3.bf16.msra.mxu1 %v952_v3  ;;  %v996_v16 = vld [vmem:[#allocation2 + $0x9] ss:$4 sm:$0x3]  ;;  %v89_v17 = vmax.f32 %v982_v11, %v986_v13  ;;  %v1002_v19 = vld [vmem:[#allocation2 + $0x2] ss:$4 sm:$0x3]  ;;  %p848_p13 = por %p847_p12, %p846_p11 }
  0x3e   :  { %667 = vmatprep.subr.bf16.mxu0 %v956_v4  ;;  %689 = vmatprep.subr.bf16.mxu1 %v956_v4  ;;  %v90_v18 = vmax.f32 %v984_v12, %v996_v16  ;;  %v1004_v20 = vld [vmem:[#allocation2 + $0xa] ss:$4 sm:$0x3]  ;;  %v1009_v22 = vld [vmem:[#allocation7 + $0x30] sm:$0xff]   ;;  %v1015_v24 = vld [vmem:[#allocation7 + $0x78] sm:$0xff]  }
  0x3f   :  { %v105_v21 = vmax.f32 %v89_v17, %v1002_v19  ;;  %v1011_v23 = vld [vmem:[#allocation2 + $0x3] ss:$4 sm:$0x3]  ;;  %v1017_v25 = vld [vmem:[#allocation2 + $0xb] ss:$4 sm:$0x3]  ;;  %p849_p0 = pnand %p848_p13, %p842_p10 }
  0x40   :  { %v106_v26 = vmax.f32 %v90_v18, %v1004_v20  ;;  %v1025_v28 = vld [vmem:[#allocation7 + $0x38] sm:$0xff]   ;;  %v66_v46 = vld [vmem:[#allocation5] ss:$4 sm:$0x3] }
  0x41   :  { %668 = vmatpush3.bf16.msra.mxu0 %v960_v5  ;;  %690 = vmatpush3.bf16.msra.mxu1 %v960_v5  ;;  %v1021_v27 = vmax.f32 %v105_v21, %v1011_v23  ;;  %v68_v47 = vld [vmem:[#allocation5 + $0x8] ss:$4 sm:$0x3]  ;;  %vm69_vm0 = vcmp.gt.f32.partialorder %v66_v46, -inf }
  0x42   :  { %669 = vmatprep.subr.bf16.mxu0 %v964_v6  ;;  %691 = vmatprep.subr.bf16.mxu1 %v964_v6  ;;  %v1028_v29 = vmax.f32 %v106_v26, %v1017_v25  ;;  %vm70_vm1 = vcmp.gt.f32.partialorder %v68_v47, -inf  ;;  %v71_v52 = vsel %vm69_vm0, %v66_v46, -inf  ;;  %v80_v53 = vld [vmem:[#allocation5 + $0x1] ss:$4 sm:$0x3] }
  0x43   :  { %v121_v30 = vsub.f32 %v982_v11, %v1021_v27  ;;  %v129_v31 = vsub.f32 %v986_v13, %v1021_v27  ;;  %v137_v32 = vsub.f32 %v1002_v19, %v1021_v27  ;;  %v145_v38 = vsub.f32 %v1011_v23, %v1021_v27  ;;  %v82_v57 = vld [vmem:[#allocation5 + $0x9] ss:$4 sm:$0x3]  ;;  %v96_v21 = vld [vmem:[#allocation5 + $0x2] ss:$4 sm:$0x3] }
  0x44   :  { %v122_v33 = vsub.f32 %v984_v12, %v1028_v29  ;;  %v130_v34 = vsub.f32 %v996_v16, %v1028_v29  ;;  %v138_v35 = vsub.f32 %v1004_v20, %v1028_v29  ;;  %v146_v41 = vsub.f32 %v1017_v25, %v1028_v29 }
  0x45   :  { %670 = vmatpush3.bf16.msra.mxu0 %v968_v7  ;;  %692 = vmatpush3.bf16.msra.mxu1 %v968_v7  ;;  %v123_v36 = vmul.f32 1.442695, %v121_v30  ;;  %v131_v37 = vmul.f32 1.442695, %v129_v31  ;;  %v139_v42 = vmul.f32 1.442695, %v137_v32  ;;  %vm83_vm2 = vcmp.gt.f32.partialorder %v80_v53, %v71_v52 }
  0x46   :  { %671 = vmatprep.subr.bf16.mxu0 %v972_v8  ;;  %693 = vmatprep.subr.bf16.mxu1 %v972_v8  ;;  %v125_v39 = vmul.f32 1.442695, %v122_v33  ;;  %v133_v40 = vmul.f32 1.442695, %v130_v34  ;;  %v141_v43 = vmul.f32 1.442695, %v138_v35  ;;  %v85_v18 = vsel %vm83_vm2, %v80_v53, %v71_v52 }
  0x47   :  { %755 = vpow2.f32 %v123_v36  ;;  %v147_v44 = vmul.f32 1.442695, %v145_v38  ;;  %v149_v45 = vmul.f32 1.442695, %v146_v41  ;;  %v72_v56 = vsel %vm70_vm1, %v68_v47, -inf }
  0x48   :  { %757 = vpow2.f32 %v125_v39  ;;  %vm84_vm3 = vcmp.gt.f32.partialorder %v82_v57, %v72_v56  ;;  %v98_v30 = vld [vmem:[#allocation5 + $0xa] ss:$4 sm:$0x3]  ;;  %v73_v31 = vsel %vm69_vm0, %v982_v11, 0.0  ;;  %vm99_vm4 = vcmp.gt.f32.partialorder %v96_v21, %v85_v18 }
  0x49   :  { %672 = vmatpush3.bf16.msra.mxu0 %v976_v9  ;;  %694 = vmatpush3.bf16.msra.mxu1 %v976_v9  ;;  %759 = vpow2.f32 %v131_v37  ;;  %v86_v26 = vsel %vm84_vm3, %v82_v57, %v72_v56  ;;  %v74_v32 = vsel %vm70_vm1, %v984_v12, 0.0  ;;  %v87_v33 = vsel %vm83_vm2, %v986_v13, %v73_v31  ;;  %v112_v35 = vld [vmem:[#allocation5 + $0x3] ss:$4 sm:$0x3] }
  0x4a   :  { %673 = vmatprep.subr.bf16.mxu0 %v980_v10  ;;  %695 = vmatprep.subr.bf16.mxu1 %v980_v10  ;;  %761 = vpow2.f32 %v133_v40  ;;  %vm100_vm5 = vcmp.gt.f32.partialorder %v98_v30, %v86_v26  ;;  %v101_v34 = vsel %vm99_vm4, %v96_v21, %v85_v18  ;;  %v195_v36 = vlaneseq  ;;  %v114_v39 = vld [vmem:[#allocation5 + $0xb] ss:$4 sm:$0x3] }
  0x4b   :  { %763 = vpow2.f32 %v139_v42  ;;  %v88_v37 = vsel %vm84_vm3, %v996_v16, %v74_v32  ;;  %v102_v38 = vsel %vm100_vm5, %v98_v30, %v86_v26  ;;  %v103_v40 = vsel %vm99_vm4, %v1002_v19, %v87_v33 }
  0x4c   :  { %765 = vpow2.f32 %v141_v43  ;;  %vm115_vm6 = vcmp.gt.f32.partialorder %v112_v35, %v101_v34  ;;  %v104_v41 = vsel %vm100_vm5, %v1004_v20, %v88_v37  ;;  %vm116_vm7 = vcmp.gt.f32.partialorder %v114_v39, %v102_v38 }
  0x4d   :  { %674 = vmatpush3.bf16.msra.mxu0 %v990_v14  ;;  %696 = vmatpush3.bf16.msra.mxu1 %v990_v14  ;;  %767 = vpow2.f32 %v147_v44  ;;  %v196_v12 = vshrl.u32 %v195_v36, 7  ;;  %v117_v13 = vsel %vm115_vm6, %v1011_v23, %v103_v40  ;;  %v118_v47 = vsel %vm116_vm7, %v1017_v25, %v104_v41 }
  0x4e   :  { %675 = vmatprep.subr.bf16.mxu0 %v994_v15  ;;  %697 = vmatprep.subr.bf16.mxu1 %v994_v15  ;;  %769 = vpow2.f32 %v149_v45  ;;  %v876_v45 = vmov 1966171168  }
  0x4f   :  { %v229_v46 = vunpack.c.l.s4 %v876_v45  ;;  %v1069_v19 = vsub.s32 0, %v196_v12 }
  0x51   :  { %676 = vmatpush3.bf16.msra.mxu0 %v1009_v22  ;;  %698 = vmatpush3.bf16.msra.mxu1 %v1009_v22  ;;  %v756_v48 = vpop.eup %755 }
  0x52   :  { %677 = vmatprep.subr.bf16.mxu0 %v1015_v24  ;;  %699 = vmatprep.subr.bf16.mxu1 %v1015_v24  ;;  %v758_v49 = vpop.eup %757 }
  0x53   :  { %v760_v50 = vpop.eup %759 }
  0x54   :  { %v762_v51 = vpop.eup %761  ;;  %v135_v54 = vadd.f32 %v760_v50, %v756_v48 }
  0x55   :  { %678 = vmatpush3.bf16.msra.mxu0 %v1025_v28  ;;  %700 = vmatpush3.bf16.msra.mxu1 %v1025_v28  ;;  %v764_v55 = vpop.eup %763  ;;  %v136_v58 = vadd.f32 %v762_v51, %v758_v49  ;;  %v1071_v49 = vsub.s32 1, %v196_v12  ;;  %v230_v51 = vunpack.c.0.s8 %v229_v46 }
  0x56   :  { %707 = vmatprep.subr.bf16.mxu0 %v942_v0  ;;  %v766_v59 = vpop.eup %765  ;;  %v143_v60 = vadd.f32 %v764_v55, %v135_v54 }
  0x57   :  { %v768_v61 = vpop.eup %767  ;;  %v144_v62 = vadd.f32 %v766_v59, %v136_v58 }
  0x58   :  { %v770_v63 = vpop.eup %769  ;;  %v151_v0 = vadd.f32 %v768_v61, %v143_v60 }
  0x59   :  { %v152_v17 = vadd.f32 %v770_v63, %v144_v62 }
  0x5a   :  { %771 = vlog2.f32 %v151_v0 }
  0x5b   :  { %773 = vlog2.f32 %v152_v17 }
  0x64   :  { %v772_v11 = vpop.eup %771 }
  0x65   :  { %v774_v42 = vpop.eup %773  ;;  %v154_v43 = vmul.f32 0.6931472, %v772_v11 }
  0x66   :  { %v156_v44 = vmul.f32 0.6931472, %v774_v42 }
  0x67   :  { %v157_v16 = vadd.f32 %v154_v43, %v1021_v27 }
  0x68   :  { %v158_v48 = vadd.f32 %v156_v44, %v1028_v29  ;;  %v233_v29 = vsub.s32 %v230_v51, %v196_v12 }
  0x69   :  { %v159_v20 = vsub.f32 %v157_v16, %v117_v13 }
  0x6a   :  { %v160_v50 = vsub.f32 %v158_v48, %v118_v47 }
  0x6b   :  { %v198_v52 = vrot.slane %v159_v20, %v1069_v19  ;;  %v202_v23 = vrot.slane %v159_v20, %v1071_v49 }
  0x6c   :  { %v206_v53 = vrot.slane %v160_v50, %v1069_v19  ;;  %v210_v54 = vrot.slane %v160_v50, %v1071_v49 }
  0x6d   :  { %v215_v25 = vpack.c.bf16 %v198_v52, %v198_v52  ;;  %v216_v55 = vpack.c.bf16 %v202_v23, %v202_v23 }
  0x6e   :  { %v217_v27 = vpack.c.bf16 %v206_v53, %v206_v53  ;;  %v218_v56 = vpack.c.bf16 %v210_v54, %v210_v54 }
  0x6f   :  { %v219_v57 = vunpack.c.l.bf16 %v215_v25  ;;  %v220_v58 = vunpack.c.l.bf16 %v216_v55  ;;  %v513_v59 = vunpack.c.l.b16 %v216_v55  ;;  %v512_v60 = vunpack.c.l.b16 %v215_v25 }
  0x70   :  { %v221_v61 = vunpack.c.l.bf16 %v217_v27  ;;  %v222_v62 = vunpack.c.l.bf16 %v218_v56  ;;  %v515_v63 = vunpack.c.l.b16 %v218_v56  ;;  %v514_v0 = vunpack.c.l.b16 %v217_v27 }
  0x71   :  { %v227_v17 = vcombine.low %v219_v57, %v220_v58 }
  0x72   :  { %v242_v18 = vcombine.low %v221_v61, %v222_v62  ;;  %v518_v21 = vrot.slane %v515_v63, 7  ;;  %v516_v26 = vrot.slane %v514_v0, 7 }
  0x73   :  { %v234_v30 = vrot.slane %v227_v17, %v233_v29 }
  0x74   :  { %v249_v31 = vrot.slane %v242_v18, %v233_v29  ;;  %v519_v32 = vsel %vm364_vm8, %v518_v21, %v513_v59  ;;  %v517_v33 = vsel %vm364_vm8, %v516_v26, %v512_v60 }
  0x75   :  { %v241_v34 = vrot.slane %v234_v30, %v233_v29  ;;  %v521_v35 = vpack.c.b16 %v519_v32, %v519_v32  ;;  %v520_v36 = vpack.c.b16 %v517_v33, %v517_v33 }
  0x76   :  { %v256_v37 = vrot.slane %v249_v31, %v233_v29 }
  0x77   :  { %v259_v38 = vsub.f32 %v159_v20, %v241_v34  ;;  %556 = vmatprep.mubr.bf16.mxu1 %v521_v35 }
  0x78   :  { %v260_v39 = vsub.f32 %v160_v50, %v256_v37  ;;  %557 = vmatmul.mubr.bf16.vlgmr.msra.gmra.mrb[0].mxu1 %v520_v36 }
  0x79   :  { %v266_v40 = vrot.slane %v259_v38, %v1069_v19  ;;  %v270_v11 = vrot.slane %v259_v38, %v1071_v49 }
  0x7a   :  { %v274_v41 = vrot.slane %v260_v39, %v1069_v19  ;;  %v278_v12 = vrot.slane %v260_v39, %v1071_v49 }
  0x7b   :  { %v283_v42 = vpack.c.bf16 %v266_v40, %v266_v40  ;;  %v284_v43 = vpack.c.bf16 %v270_v11, %v270_v11 }
  0x7c   :  { %v285_v13 = vpack.c.bf16 %v274_v41, %v274_v41  ;;  %v286_v44 = vpack.c.bf16 %v278_v12, %v278_v12 }
  0x7d   :  { %v287_v45 = vunpack.c.l.bf16 %v283_v42  ;;  %v288_v46 = vunpack.c.l.bf16 %v284_v43  ;;  %v360_v47 = vunpack.c.l.b16 %v284_v43  ;;  %v359_v16 = vunpack.c.l.b16 %v283_v42 }
  0x7e   :  { %v289_v48 = vunpack.c.l.bf16 %v285_v13  ;;  %v290_v20 = vunpack.c.l.bf16 %v286_v44  ;;  %v362_v50 = vunpack.c.l.b16 %v286_v44  ;;  %v361_v51 = vunpack.c.l.b16 %v285_v13 }
  0x7f   :  { %v295_v52 = vcombine.low %v287_v45, %v288_v46 }
  0x80   :  { %v310_v23 = vcombine.low %v289_v48, %v290_v20  ;;  %v366_v53 = vrot.slane %v362_v50, 7  ;;  %v363_v54 = vrot.slane %v361_v51, 7 }
  0x81   :  { %v302_v25 = vrot.slane %v295_v52, %v233_v29 }
  0x82   :  { %v317_v55 = vrot.slane %v310_v23, %v233_v29  ;;  %v367_v27 = vsel %vm364_vm8, %v366_v53, %v360_v47  ;;  %v365_v56 = vsel %vm364_vm8, %v363_v54, %v359_v16 }
  0x83   :  { %v369_v57 = vpack.c.b16 %v367_v27, %v367_v27  ;;  %v368_v58 = vpack.c.b16 %v365_v56, %v365_v56  ;;  %v309_v59 = vrot.slane %v302_v25, %v233_v29 }
  0x84   :  { %v324_v60 = vrot.slane %v317_v55, %v233_v29 }
  0x85   :  { %500 = vmatprep.mubr.bf16.mxu0 %v369_v57  ;;  %v327_v61 = vsub.f32 %v259_v38, %v309_v59 }
  0x86   :  { %501 = vmatmul.mubr.bf16.vlgmr.msra.gmra.mrb[0].mxu0 %v368_v58  ;;  %v328_v62 = vsub.f32 %v260_v39, %v324_v60 }
  0x87   :  { %708 = vmatpush3.bf16.msra.mxu0 %v944_v1  ;;  %v338_v63 = vrot.slane %v327_v61, %v1071_v49 }
  0x88   :  { %709 = vmatprep.subr.bf16.mxu0 %v948_v2  ;;  %v346_v0 = vrot.slane %v328_v62, %v1071_v49  ;;  %v342_v30 = vrot.slane %v328_v62, %v1069_v19  ;;  %v334_v49 = vrot.slane %v327_v61, %v1069_v19 }
  0x89   :  { %v352_v17 = vpack.c.bf16 %v338_v63, %v338_v63 }
  0x8a   :  { %v354_v18 = vpack.c.bf16 %v346_v0, %v346_v0 }
  0x8b   :  { %710 = vmatpush3.bf16.msra.mxu0 %v952_v3  ;;  %v569_v21 = vunpack.c.l.b16 %v352_v17  ;;  %v353_v3 = vpack.c.bf16 %v342_v30, %v342_v30 }
  0x8c   :  { %711 = vmatprep.subr.bf16.mxu0 %v956_v4  ;;  %v571_v29 = vunpack.c.l.b16 %v354_v18  ;;  %v351_v4 = vpack.c.bf16 %v334_v49, %v334_v49 }
  0x8d   :  { %v570_v31 = vunpack.c.l.b16 %v353_v3 }
  0x8e   :  { %v574_v26 = vrot.slane %v571_v29, 7 }
  0x8f   :  { %712 = vmatpush3.bf16.msra.mxu0 %v960_v5  ;;  %v568_v5 = vunpack.c.l.b16 %v351_v4 }
  0x90   :  { %713 = vmatprep.subr.bf16.mxu0 %v964_v6  ;;  %v575_v1 = vsel %vm364_vm8, %v574_v26, %v569_v21  ;;  %v572_v6 = vrot.slane %v570_v31, 7 }
  0x91   :  { %v577_v2 = vpack.c.b16 %v575_v1, %v575_v1 }
  0x93   :  { %714 = vmatpush3.bf16.msra.mxu0 %v968_v7  ;;  %612 = vmatprep.mubr.bf16.mxu0 %v577_v2  ;;  %v573_v7 = vsel %vm364_vm8, %v572_v6, %v568_v5 }
  0x94   :  { %715 = vmatprep.subr.bf16.mxu0 %v972_v8  ;;  %v576_v19 = vpack.c.b16 %v573_v7, %v573_v7  ;;  %v877_v8 = vmov 0.0  }
  0x95   :  { %62 = vst.msk [vmem:[#allocation8] sm:$0x3] %vm61_vm9, %v877_v8 }
  0x97   :  { %716 = vmatpush3.bf16.msra.mxu0 %v976_v9 }
  0x98   :  { %717 = vmatprep.subr.bf16.mxu0 %v980_v10 }
  0x9b   :  { %718 = vmatpush3.bf16.msra.mxu0 %v990_v14 }
  0x9c   :  { %719 = vmatprep.subr.bf16.mxu0 %v994_v15  ;;  %v621_v40 = vld [vmem:[#allocation8] sm:$0x3] }
  0x9f   :  { %720 = vmatpush3.bf16.msra.mxu0 %v1009_v22 }
  0xa0   :  { %721 = vmatprep.subr.bf16.mxu0 %v1015_v24 }
  0xa3   :  { %722 = vmatpush3.bf16.msra.mxu0 %v1025_v28 }
  0xa6   :  { %613 = vmatmul.mubr.bf16.vlgmr.msra.gmra.mrb[4].mxu0 %v576_v19 }
 0x14b   :  { %v701_v9 = vpop.f32.mrb[0].mxu1 }
 0x14c   :  { %v702_v10 = vpop.f32.mrb[1].mxu1 }
 0x14d   :  { %v703_v14 = vadd.f32 %v702_v10, %v701_v9  ;;  %v704_v32 = vpop.f32.mrb[2].mxu1 }
 0x14e   :  { %v705_v33 = vpop.f32.mrb[3].mxu1 }
 0x159   :  { %v679_v15 = vpop.f32.mrb[0].mxu0 }
 0x15a   :  { %v680_v34 = vpop.f32.mrb[1].mxu0 }
 0x15b   :  { %v681_v22 = vadd.f32 %v680_v34, %v679_v15  ;;  %v682_v35 = vpop.f32.mrb[2].mxu0 }
 0x15c   :  { %v683_v36 = vpop.f32.mrb[3].mxu0 }
 0x15d   :  { %v559_v37 = vadd.f32 %v703_v14, %v681_v22 }
 0x179   :  { %v723_v24 = vpop.f32.mrb[4].mxu0 }
 0x17a   :  { %v724_v38 = vpop.f32.mrb[5].mxu0 }
 0x17b   :  { %v725_v39 = vadd.f32 %v724_v38, %v723_v24  ;;  %v726_v28 = vpop.f32.mrb[6].mxu0 }
 0x17c   :  { %v727_v11 = vpop.f32.mrb[7].mxu0 }
 0x17d   :  { %v620_v41 = vadd.f32 %v725_v39, %v559_v37 }
 0x17f   :  { %v622_v12 = vadd.f32 %v621_v40, %v620_v41 }
 0x181   :  { %624 = vst.msk [vmem:[#allocation8] sm:$0x3] %vm61_vm9, %v622_v12 }
 0x188   :  { %v628_v42 = vld [vmem:[#allocation8] sm:$0x3] }
 0x189   :  { %v629_v43 = vmul.f32 0.0625, %v628_v42 }
 0x18b   :  { %630 = vst.msk [vmem:[#allocation8] sm:$0x3] %vm61_vm9, %v629_v43 }
 0x18c   :  { %852 = shalt.err (!%p849_p0)
}
 0x18d   :  { %s853_s27 = scalar_lea.hbm %s1124_s3, 32 }
 0x18e   :  { %p854_p1 = scmp.ne.s32.totalorder %s1124_s3, %s853_s27  ;;  %p857_p2 = scmp.lt.u32.totalorder %s853_s27, %s1124_s3 }
 0x190   :  { %p859_p3 = pnand %p857_p2, %p854_p1 }
 0x192   :  { %862 = shalt.err (!%p859_p3)
}
 0x193   :  { %640 = dma.vmem_to_hbm [thread:$0]  %s638_s23, 32, %s1124_s3, [#allocation4]  }
 0x194   :  { %867 = dma.done.wait [#allocation4], 32  }
 0x195   :  { %868 = vsyncadd [#allocation4], 4294967264 }
 0x196   :  { %644 = vsyncpa [#allocation3], 1 }
 0x197   :  { %645 = vsyncpa [#allocation6], 1 }
 0x198   :  { %646 = vsyncpa [#allocation4], 1 }

</bundles_post_ra>
